<compile_context>
chip_gen: v7x
topology: tpu7x:2x2x1
jax: 0.10.0
libtpu: 0.0.40
codegen_flags: <defaults>
</compile_context>

<pallas_src>
import functools

import jax
import jax.numpy as jnp
from jax.experimental import pallas as pl
from jax.experimental.pallas import tpu as pltpu

_LANE = 128
_SUBLANE = 8


def _rup(v, m):
    return ((v + m - 1) // m) * m


def _vmem_capacity_bytes():
    try:
        cap = getattr(pltpu.get_tpu_info(), "vmem_capacity_bytes", None)
        if cap:
            return int(cap)
    except Exception:
        pass
    return 64 << 20  # v7x-safe fallback


def _largest_divisor_leq(n, cap):
    cap = max(1, min(n, int(cap)))
    for d in range(cap, 0, -1):
        if n % d == 0:
            return d
    return 1


def _pick_tn(n):
    """Lane block for the [L, B*C] layout: >=128, <=1024 (fits the default
    scoped-VMEM limit on v5e/v6e/v7x), and >=2 grid steps when possible."""
    n128 = _rup(n, _LANE)
    if n128 <= _LANE:
        return _LANE
    half = (n128 // 2) // _LANE * _LANE
    return int(min(1024, max(_LANE, half)))


def _moving_avg_matrix(L, kernel_size, dtype=jnp.float32):
    """M with M @ x_time == AvgPool1d(replicate_pad(x_time), K, stride=1)."""
    pad = (kernel_size - 1) // 2
    lp = L + 2 * pad
    src = jnp.clip(jnp.arange(lp) - pad, 0, L - 1)                    # padded idx -> src idx
    P = (src[:, None] == jnp.arange(L)[None, :]).astype(dtype)        # [lp, L]
    i = jnp.arange(L)[:, None]
    j = jnp.arange(lp)[None, :]
    S = ((j >= i) & (j < i + kernel_size)).astype(dtype) / kernel_size  # [L, lp]
    return S @ P                                                      # [L, L]


# ----------------------------- kernels ---------------------------------------

def _dlinear_shared_kernel(w_ref, b_ref, x_ref, o_ref):
    # w: [F, L], x: [L, N], b: [F, 1] -> o: [F, N]
    acc = jnp.dot(w_ref[...], x_ref[...], preferred_element_type=jnp.float32)
    o_ref[...] = (acc + b_ref[...]).astype(o_ref.dtype)


def _dlinear_individual_kernel(wt_ref, ws_ref, b_ref, x_ref, ma_ref, o_ref):
    # wt/ws: [tc, F, L], x/ma: [tc, L, B], b: [tc, F, 1] -> o: [tc, F, B]
    dn = (((2,), (1,)), ((0,), (0,)))
    ma = ma_ref[...]
    trend = x_ref[...] - ma
    acc = jax.lax.dot_general(wt_ref[...], trend, dn,
                              preferred_element_type=jnp.float32)
    acc = acc + jax.lax.dot_general(ws_ref[...], ma, dn,
                                    preferred_element_type=jnp.float32)
    o_ref[...] = (acc + b_ref[...]).astype(o_ref.dtype)


# ----------------------------- wrapper ----------------------------------------

def ltsf_dlinear(x, wt, bt, ws, bs, *, kernel_size, forecast_size, individual,
                 compute_dtype=None):
    """LTSF_DLinear forward.  x: [B, L, C] -> [B, F, C].

    individual=False: wt/ws [F, L],    bt/bs [F]
    individual=True : wt/ws [C, F, L], bt/bs [C, F]
    compute_dtype: optional reduced precision (e.g. jnp.bfloat16) for x and the
      weights fed to the kernels; decomposition/fold and accumulation stay f32.
    """
    if kernel_size % 2 != 1:
        raise ValueError("kernel_size must be odd (replicate-pad AvgPool1d "
                         "decomposition only matches the module for odd K)")
    B, L, C = x.shape
    F = forecast_size
    cd = compute_dtype if compute_dtype is not None else x.dtype
    M = _moving_avg_matrix(L, kernel_size, jnp.float32)               # [L, L]

    if not individual:
        # Fold the decomposition into effective weights once (O(F*L^2), cheap).
        wt32 = wt.astype(jnp.float32)
        ws32 = ws.astype(jnp.float32)
        w_eff = wt32 + (ws32 - wt32) @ M                              # [F, L]
        b_eff = (bt.astype(jnp.float32) + bs.astype(jnp.float32)).reshape(F, 1)
        w_c = w_eff.astype(cd)

        # Native-layout path: grid over batch, C on lanes, no wrapper
        # transpose/pad round trips.  Used when C is reasonably lane-dense and
        # the per-step blocks fit comfortably under the default scoped VMEM.
        native_step_bytes = (
            2 * 4 * (_rup(L, _SUBLANE) * _rup(C, _LANE)
                     + _rup(F, _SUBLANE) * _rup(C, _LANE))
            + 4 * _rup(F, _SUBLANE) * _rup(L, _LANE))
        if C >= _LANE // 2 and native_step_bytes <= (12 << 20):
            return pl.pallas_call(
                _dlinear_shared_kernel,
                out_shape=jax.ShapeDtypeStruct((B, F, C), x.dtype),
                grid_spec=pltpu.PrefetchScalarGridSpec(
                    num_scalar_prefetch=0,
                    grid=(B,),
                    in_specs=[
                        pl.BlockSpec((F, L), lambda b: (0, 0)),
                        pl.BlockSpec((F, 1), lambda b: (0, 0)),
                        pl.BlockSpec((None, L, C), lambda b: (b, 0, 0)),
                    ],
                    out_specs=pl.BlockSpec((None, F, C), lambda b: (b, 0, 0)),
                ),
                compiler_params=pltpu.CompilerParams(
                    dimension_semantics=("parallel",)),
            )(w_c, b_eff, x.astype(cd))

        # Small-C fallback: lane-dense [L, B*C] presentation.
        N = B * C
        tn = _pick_tn(N)
        Np = _rup(N, tn)
        x_r = jnp.transpose(x.astype(cd), (1, 0, 2)).reshape(L, N)
        if Np != N:
            x_r = jnp.pad(x_r, ((0, 0), (0, Np - N)))
        out_p = pl.pallas_call(
            _dlinear_shared_kernel,
            out_shape=jax.ShapeDtypeStruct((F, Np), x.dtype),
            grid_spec=pltpu.PrefetchScalarGridSpec(
                num_scalar_prefetch=0,
                grid=(Np // tn,),
                in_specs=[
                    pl.BlockSpec((F, L), lambda n: (0, 0)),
                    pl.BlockSpec((F, 1), lambda n: (0, 0)),
                    pl.BlockSpec((L, tn), lambda n: (0, n)),
                ],
                out_specs=pl.BlockSpec((F, tn), lambda n: (0, n)),
            ),
            compiler_params=pltpu.CompilerParams(
                dimension_semantics=("parallel",)),
        )(w_c, b_eff, x_r)
        out = out_p[:, :N].reshape(F, B, C)
        return jnp.transpose(out, (1, 0, 2))                          # [B, F, C]

    # -------------------- individual=True ------------------------------------
    # No per-channel O(C*F*L^2) fold: compute the moving average once in XLA
    # (shared across channels) and stream the native-layout per-channel weights
    # through the kernel exactly once each (two channel-batched MXU matmuls).
    x_t = jnp.transpose(x, (2, 1, 0))                                 # [C, L, B]
    ma_t = jnp.einsum('ml,clb->cmb', M, x_t.astype(jnp.float32))      # [C, L, B]
    b_sum = (bt.astype(jnp.float32) + bs.astype(jnp.float32))[:, :, None]  # [C, F, 1]
    x_t = x_t.astype(cd)
    ma_t = ma_t.astype(cd)
    wt_c = wt.astype(cd)
    ws_c = ws.astype(cd)

    # VMEM-budgeted channel block; tc divides C exactly -> no weight copy/pad.
    per_c = 4 * (2 * _rup(L, _SUBLANE) * _rup(B, _LANE)       # x + ma blocks
                 + 2 * _rup(F, _SUBLANE) * _rup(L, _LANE)     # wt + ws blocks
                 + _rup(F, _SUBLANE) * _rup(B, _LANE)         # out block
                 + _rup(F, _SUBLANE) * _LANE)                 # bias block
    vmem_limit = int(_vmem_capacity_bytes() * 3 // 4)
    budget = vmem_limit * 3 // 4
    tc_cap = max(1, budget // (3 * per_c))    # x2 buffering + f32 temporaries
    if C >= 2:
        tc_cap = min(tc_cap, (C + 1) // 2)    # >=2 grid steps for megacore
    tc = _largest_divisor_leq(C, tc_cap)

    out_p = pl.pallas_call(
        _dlinear_individual_kernel,
        out_shape=jax.ShapeDtypeStruct((C, F, B), x.dtype),
        grid_spec=pltpu.PrefetchScalarGridSpec(
            num_scalar_prefetch=0,
            grid=(C // tc,),
            in_specs=[
                pl.BlockSpec((tc, F, L), lambda c: (c, 0, 0)),
                pl.BlockSpec((tc, F, L), lambda c: (c, 0, 0)),
                pl.BlockSpec((tc, F, 1), lambda c: (c, 0, 0)),
                pl.BlockSpec((tc, L, B), lambda c: (c, 0, 0)),
                pl.BlockSpec((tc, L, B), lambda c: (c, 0, 0)),
            ],
            out_specs=pl.BlockSpec((tc, F, B), lambda c: (c, 0, 0)),
        ),
        compiler_params=pltpu.CompilerParams(
            dimension_semantics=("parallel",),
            vmem_limit_bytes=vmem_limit),
    )(wt_c, ws_c, b_sum, x_t, ma_t)

    return jnp.transpose(out_p, (2, 1, 0))                            # [B, F, C]


# ----------------------------- reference --------------------------------------

def ltsf_dlinear_ref(x, wt, bt, ws, bs, *, kernel_size, individual):
    """Pure-JAX reference mirroring the PyTorch forward."""
    B, L, C = x.shape
    pad = (kernel_size - 1) // 2
    front = jnp.repeat(x[:, :1, :], pad, axis=1)
    end = jnp.repeat(x[:, -1:, :], pad, axis=1)
    xp = jnp.concatenate([front, x, end], axis=1)
    ma = jnp.mean(jnp.stack([xp[:, j:j + L, :] for j in range(kernel_size)], 0), 0)
    res = x - ma                                                      # trend_init
    res_p = jnp.transpose(res, (0, 2, 1))                             # [B, C, L]
    ma_p = jnp.transpose(ma, (0, 2, 1))
    if individual:
        trend = jnp.einsum('cfl,bcl->bcf', wt, res_p) + bt[None]
        seas = jnp.einsum('cfl,bcl->bcf', ws, ma_p) + bs[None]
    else:
        trend = jnp.einsum('fl,bcl->bcf', wt, res_p) + bt
        seas = jnp.einsum('fl,bcl->bcf', ws, ma_p) + bs
    return jnp.transpose(trend + seas, (0, 2, 1))                     # [B, F, C]


def _make_params(key, window, forecast, channels, individual):
    k1, k2, k3, k4 = jax.random.split(key, 4)
    bound = 1.0 / jnp.sqrt(window)
    if individual:
        shape_w, shape_b = (channels, forecast, window), (channels, forecast)
    else:
        shape_w, shape_b = (forecast, window), (forecast,)
    # Module init is 1/window * ones; perturb so the two heads differ and the
    # decomposition (asymmetric in Wt/Ws) is actually exercised.
    wt = 1.0 / window + 0.1 * jax.random.normal(k1, shape_w, jnp.float32)
    ws = 1.0 / window + 0.1 * jax.random.normal(k2, shape_w, jnp.float32)
    bt = jax.random.uniform(k3, shape_b, jnp.float32, -bound, bound)
    bs = jax.random.uniform(k4, shape_b, jnp.float32, -bound, bound)
    return wt, bt, ws, bs


if __name__ == "__main__":
    key = jax.random.PRNGKey(0)
    configs = [
        # (B, L, F, C, K, individual)
        (2, 16, 8, 4, 5, False),    # shared, small C  -> [L, B*C] lane-dense path
        (2, 16, 8, 96, 5, False),   # shared, wide C   -> native [B, L, C] path
        (2, 16, 8, 4, 5, True),     # per-channel weights (batched-matmul path)
    ]
    for i, (B, L, F, C, K, individual) in enumerate(configs):
        kx, kp = jax.random.split(jax.random.fold_in(key, i))
        x = jax.random.normal(kx, (B, L, C), jnp.float32)
        wt, bt, ws, bs = _make_params(kp, L, F, C, individual)
        fwd = jax.jit(functools.partial(
            ltsf_dlinear, kernel_size=K, forecast_size=F, individual=individual))
        out = jax.block_until_ready(fwd(x, wt, bt, ws, bs))
        ref = ltsf_dlinear_ref(x, wt, bt, ws, bs, kernel_size=K, individual=individual)
        assert out.shape == (B, F, C), out.shape
        err = float(jnp.max(jnp.abs(out - ref)))
        assert err < 1e-4, f"mismatch (cfg {i}, individual={individual}): {err}"

    print("KERNEL_OK")
</pallas_src>

<mosaic_0001>
module attributes {stable_mosaic.version = 11 : i64} {
  func.func @_dlinear_shared_kernel(%arg0: i32, %arg1: memref<8x16xf32, #tpu.memory_space<vmem>>, %arg2: memref<8x1xf32, #tpu.memory_space<vmem>>, %arg3: memref<16x128xf32, #tpu.memory_space<vmem>>, %arg4: memref<8x128xf32, #tpu.memory_space<vmem>>) attributes {dimension_semantics = [#tpu.dimension_semantics<parallel>], iteration_bounds = array<i64: 1>, scalar_prefetch = 0 : i64, scratch_operands = 0 : i64, tpu.core_type = #tpu.core_type<tc>, window_params = [{pipeline_mode = #tpu.pipeline_mode<synchronous>, transform_indices = @transform_0, window_bounds = array<i64: 8, 16>}, {pipeline_mode = #tpu.pipeline_mode<synchronous>, transform_indices = @transform_1, window_bounds = array<i64: 8, 1>}, {transform_indices = @transform_2, window_bounds = array<i64: 16, 128>}, {transform_indices = @transform_3, window_bounds = array<i64: 8, 128>}]} {
    %c0 = arith.constant 0 : index
    %c0_0 = arith.constant 0 : index
    %0 = vector.load %arg1[%c0, %c0_0] : memref<8x16xf32, #tpu.memory_space<vmem>>, vector<8x16xf32>
    %c0_1 = arith.constant 0 : index
    %c0_2 = arith.constant 0 : index
    %1 = vector.load %arg3[%c0_1, %c0_2] : memref<16x128xf32, #tpu.memory_space<vmem>>, vector<16x128xf32>
    %cst = arith.constant dense<0.000000e+00> : vector<8x128xf32>
    %2 = tpu.matmul %0, %1, %cst {dimension_numbers = #tpu.dot_dimension_numbers<[1], [0], [0], [1], [0, 0, 1, 1], [], []>} : vector<8x16xf32>, vector<16x128xf32>, vector<8x128xf32> -> vector<8x128xf32>
    %c0_3 = arith.constant 0 : index
    %c0_4 = arith.constant 0 : index
    %3 = vector.load %arg2[%c0_3, %c0_4] : memref<8x1xf32, #tpu.memory_space<vmem>>, vector<8x1xf32>
    %4 = vector.broadcast %3 : vector<8x1xf32> to vector<8x128xf32>
    %5 = arith.addf %2, %4 : vector<8x128xf32>
    %c0_5 = arith.constant 0 : index
    %c0_6 = arith.constant 0 : index
    %6 = vector.load %arg4[%c0_5, %c0_6] : memref<8x128xf32, #tpu.memory_space<vmem>>, vector<8x128xf32>
    tpu.vector_store %arg4[%c0_5, %c0_6], %5 {strides = array<i32>} : memref<8x128xf32, #tpu.memory_space<vmem>>, vector<8x128xf32>,
    return
  }
  func.func @transform_0(%arg0: i32) -> (i32, i32) {
    %c0_i32 = arith.constant 0 : i32
    %c0_i32_0 = arith.constant 0 : i32
    %c0_i32_1 = arith.constant 0 : i32
    return %c0_i32, %c0_i32_0 : i32, i32
  }
  func.func @transform_1(%arg0: i32) -> (i32, i32) {
    %c0_i32 = arith.constant 0 : i32
    %c0_i32_0 = arith.constant 0 : i32
    %c0_i32_1 = arith.constant 0 : i32
    return %c0_i32, %c0_i32_0 : i32, i32
  }
  func.func @transform_2(%arg0: i32) -> (i32, i32) {
    %c0_i32 = arith.constant 0 : i32
    %c0_i32_0 = arith.constant 0 : i32
    return %c0_i32, %arg0 : i32, i32
  }
  func.func @transform_3(%arg0: i32) -> (i32, i32) {
    %c0_i32 = arith.constant 0 : i32
    %c0_i32_0 = arith.constant 0 : i32
    return %c0_i32, %arg0 : i32, i32
  }
}

</mosaic_0001>

<bundles_post_ra>
// kernel: ltsf_dlinear.1
= control target key start
LH: loop header
LB: loop body
LE: loop exit
PB: predicated region body
PF: predicated region fallthrough
CT: control target
= control target key end

     0   :  { %v121_v0 = vmov 0.0|0.0   ;;  %vm122_vm0 = vmmov 0   ;;  %v123_v3 = vmov 0.0   ;;  %v124_v5 = vmov 0   ;;  %s160_s2 = inlined_call_operand.vmem [shape: f32[16,128], index: 2, kind: input, shape index: {}]   ;;  %s161_s1 = inlined_call_operand.vmem [shape: f32[8,1], index: 1, kind: input, shape index: {}]   ;;  %s162_s0 = inlined_call_operand.vmem [shape: f32[8,16], index: 0, kind: input, shape index: {}]   ;;  %s163_s3 = inlined_call_operand.vmem [shape: f32[8,128], index: 3, kind: output, shape index: {}]  }
   0x1   :  { %113 = vmatprep.subr.bf16.mxu0 %v121_v0  ;;  %v15_v1 = vld [vmem:[%s160_s2] sm:$0xff]  ;;  %v16_v2 = vld [vmem:[%s160_s2 + $0x8] sm:$0xff]  ;;  %110 = vmatprep.mubr.msk.f32.mxu0 %vm122_vm0, %v123_v3  ;;  %vm23_vm1 = vcmask 130048  }
   0x2   :  { %v114_v4 = vpack.c.bf16 %v16_v2, %v15_v1  ;;  %120 = vset.pattern.permute.xlu0 %v124_v5  ;;  %v17_v6 = vld [vmem:[%s161_s1] sm:$0xff] }
   0x3   :  { %20 = vperm.xlu0 %120, %v17_v6   ;;  %v14_v7 = vld [vmem:[%s162_s0] sm:$0xff] }
   0x4   :  { %115 = vmatpush3.bf16.msra.mxu0 %v114_v4 }
   0x7   :  { %111 = vmatmul.mubr.msk.f32.vlgmr.msra.gmra.mrb[0].mxu0 %vm23_vm1, %v14_v7 }
  0x82   :  { %v21_v8 = vpop.permute.xlu0 %20 }
  0xda   :  { %v93_v9 = vpop.f32.mrb[0].mxu0 }
  0xdb   :  { %v94_v10 = vadd.f32 %v93_v9, %v21_v8  ;;  %v112_v11 = vpop.f32.mrb[1].mxu0 }
  0xdd   :  { %97 = vst [vmem:[%s163_s3] sm:$0xff] %v94_v10 }

</bundles_post_ra>
